<compile_context>
chip_gen: v7x
topology: tpu7x:2x2x1
jax: 0.10.0
libtpu: 0.0.40
codegen_flags: <defaults>
</compile_context>

<pallas_src>
import functools

import numpy as np
import jax
import jax.numpy as jnp
from jax.experimental import pallas as pl
from jax.experimental.pallas import tpu as pltpu

_SUBLANE = 8
_LANE = 128
_MAX_BLOCK_ROWS = 512     # 512 x 1024 int32 = 2 MiB per block
_MAX_BLOCK_COLS = 1024    # keeps double-buffered footprint < v5e 16 MiB scoped VMEM


def _round_up(x, m):
    return (x + m - 1) // m * m


def _largest_divisor_tile(total, step, cap):
    """Largest multiple of `step` that divides `total` and is <= cap.

    `total` is guaranteed to be a multiple of `step`, so `step` always works.
    Ensures every grid step uses a full-width tile (no ragged boundary tiles).
    """
    best = step
    t = step
    limit = min(cap, total)
    while t <= limit:
        if total % t == 0:
            best = t
        t += step
    return best


def _pad_kernel(tokens_ref, lengths_ref, out_ref, *, padding_value, col_block_offset):
    """out[b, t] = tokens[b, t] if t < lengths[b] else padding_value.

    tokens_ref : (TB, TL) tile of packed token ids (int32).
    lengths_ref: (TB, 1) per-row valid lengths (row-only index_map -> fetched
                 once per row tile, reused across all column tiles).
    out_ref    : (TB, TL) output tile (possibly aliased onto tokens).
    """
    tl = out_ref.shape[1]
    # Global column offset of this tile (grid may start at col_block_offset
    # when the fully-valid prefix is skipped on the aliased path).
    col0 = (pl.program_id(1) + col_block_offset) * tl
    col = col0 + jax.lax.broadcasted_iota(jnp.int32, out_ref.shape, dimension=1)
    mask = col < lengths_ref[...]                       # (TB,1) -> (TB,TL)
    pad = jnp.asarray(padding_value, dtype=out_ref.dtype)
    # Cast only at the final store (keeps the int32 vector path clean on v5e).
    out_ref[...] = jnp.where(mask, tokens_ref[...].astype(out_ref.dtype), pad)


def pad_batch(tokens, lengths, padding_value, out_dtype=jnp.int32, *,
              min_length=0, in_place=True,
              max_block_rows=_MAX_BLOCK_ROWS, max_block_cols=_MAX_BLOCK_COLS):
    """Device-resident pad_sequence(batch_first=True).

    tokens : (B_pad, L_pad) int32, B_pad % 8 == 0, L_pad % 128 == 0.  Row b
             holds the b-th sequence followed by don't-care values.
    lengths: (B_pad,) int32 valid lengths (0 for padding rows).
    min_length: host-known lower bound on `lengths` (static int).  On the
             aliased path, column tiles entirely below this bound are never
             read or written (they are already correct in the donated buffer).
    in_place: when True and out_dtype == tokens.dtype, the `tokens` buffer is
             DONATED and overwritten in place (caller must not reuse it).
    """
    B_pad, L_pad = tokens.shape
    assert B_pad % _SUBLANE == 0 and L_pad % _LANE == 0

    out_dtype = np.dtype(out_dtype)
    aliased = in_place and out_dtype == tokens.dtype

    # Full-width tiles on every grid step (tile sizes divide the padded dims).
    tb = _largest_divisor_tile(B_pad, _SUBLANE, max_block_rows)
    tl = _largest_divisor_tile(L_pad, _LANE, max_block_cols)
    n_row_tiles = B_pad // tb
    n_col_tiles = L_pad // tl

    # Aliased path: skip the fully-valid column prefix entirely.
    if aliased:
        j0 = min(max(int(min_length), 0) // tl, n_col_tiles)
    else:
        j0 = 0
    n_col_work = n_col_tiles - j0
    if n_col_work == 0:
        # No column tile can contain padding; the aliased buffer is already
        # the answer (only reachable on the aliased path).
        return tokens

    aliases = {0: 0} if aliased else {}

    call = pl.pallas_call(
        functools.partial(_pad_kernel, padding_value=padding_value,
                          col_block_offset=j0),
        out_shape=jax.ShapeDtypeStruct((B_pad, L_pad), out_dtype),
        grid=(n_row_tiles, n_col_work),     # column axis innermost
        in_specs=[
            pl.BlockSpec((tb, tl), lambda i, j: (i, j + j0)),
            # Row-only index map: same lengths block for every column tile.
            pl.BlockSpec((tb, 1), lambda i, j: (i, 0)),
        ],
        out_specs=pl.BlockSpec((tb, tl), lambda i, j: (i, j + j0)),
        input_output_aliases=aliases,
        compiler_params=pltpu.CompilerParams(
            dimension_semantics=("parallel", "arbitrary")),
    )
    if aliased:
        # Make the donation real (avoids a defensive copy / donation warning).
        call = jax.jit(call, donate_argnums=(0,))
    return call(tokens, lengths.reshape(B_pad, 1))


def to_tensor(input_, padding_value=None, dtype=jnp.int32):
    """JAX/Pallas equivalent of ToTensor.forward."""
    if len(input_) > 0 and isinstance(input_[0], (int, np.integer)):
        # Spec: torch.tensor(input, dtype=torch.long) -> int32 stand-in,
        # regardless of `dtype` (matches the PyTorch module).
        return jnp.asarray(input_, dtype=jnp.int32)

    if len(input_) > 0 and isinstance(input_[0], (list, tuple)):
        lengths = np.asarray([len(s) for s in input_], dtype=np.int32)
        B = len(input_)
        max_len = int(lengths.max())
        np_dtype = np.dtype(dtype)

        if padding_value is None:
            # Rectangular conversion, no padding kernel needed.
            if not (lengths == lengths[0]).all():
                raise ValueError("ragged input requires padding_value")
            return jnp.asarray(np.asarray(input_, dtype=np.int32), dtype=np_dtype)

        # Host-list fast path (perf review): the host touches every cell while
        # packing anyway, so fill with padding_value directly and skip the
        # device kernel and the post-kernel slice (removes a full HBM
        # read+write round trip).  pad_batch stays available for genuinely
        # device-resident tokens/lengths.
        packed = np.full((B, max_len), padding_value, dtype=np_dtype)
        for i, s in enumerate(input_):
            packed[i, : len(s)] = np.asarray(s, dtype=np_dtype)
        return jnp.asarray(packed)

    raise TypeError("Input type not supported")


if __name__ == "__main__":
    key = jax.random.PRNGKey(0)

    # ---- Device-resident kernel demo 1: aliased int32 path, multiple column
    # tiles (tl=128), fully-valid column prefix skipped via min_length --------
    B_pad, L_pad = 8, 512
    key, k1, k2 = jax.random.split(key, 3)
    lengths_np = np.asarray(
        jax.random.randint(k1, (B_pad,), 200, L_pad + 1, dtype=jnp.int32))
    tokens_np = np.asarray(
        jax.random.randint(k2, (B_pad, L_pad), 0, 30000, dtype=jnp.int32))
    pad_val = -1
    min_len = int(lengths_np.min())

    out = pad_batch(jnp.asarray(tokens_np), jnp.asarray(lengths_np), pad_val,
                    out_dtype=jnp.int32, min_length=min_len,
                    max_block_cols=128)   # small tiles -> exercise offset path
    out = jax.block_until_ready(out)

    ref = tokens_np.copy()
    for b in range(B_pad):
        ref[b, lengths_np[b]:] = pad_val
    assert out.shape == (B_pad, L_pad) and out.dtype == jnp.int32
    assert np.array_equal(np.asarray(out), ref)

    # ---- Device demo 2: non-aliased float32 output, fractional padding ------
    out_f = pad_batch(jnp.asarray(tokens_np), jnp.asarray(lengths_np), -2.5,
                      out_dtype=jnp.float32, min_length=min_len)
    out_f = jax.block_until_ready(out_f)
    ref_f = tokens_np.astype(np.float32)
    for b in range(B_pad):
        ref_f[b, lengths_np[b]:] = -2.5
    assert out_f.dtype == jnp.float32
    assert np.array_equal(np.asarray(out_f), ref_f)

    # ---- Host-list path (ToTensor.forward), kernel skipped ------------------
    seq_lens = [5, 8, 3, 7]
    seqs = []
    for L in seq_lens:
        key, sub = jax.random.split(key)
        ids = jax.random.randint(sub, (L,), 0, 1000, dtype=jnp.int32)
        seqs.append(np.asarray(ids).tolist())

    padded = jax.block_until_ready(to_tensor(seqs, padding_value=-1))
    B, max_len = len(seqs), max(seq_lens)
    ref_p = np.full((B, max_len), -1, dtype=np.int32)
    for i, s in enumerate(seqs):
        ref_p[i, : len(s)] = s
    assert padded.shape == (B, max_len) and padded.dtype == jnp.int32
    assert np.array_equal(np.asarray(padded), ref_p)

    # List[int] branch (pure host->device conversion, int32/long stand-in)
    single = jax.block_until_ready(to_tensor(seqs[0]))
    assert np.array_equal(np.asarray(single), np.asarray(seqs[0], dtype=np.int32))

    # padding_value=None with rectangular input
    rect = [seqs[1], list(reversed(seqs[1]))]
    rect_out = jax.block_until_ready(to_tensor(rect, padding_value=None))
    assert np.array_equal(np.asarray(rect_out), np.asarray(rect, dtype=np.int32))

    print("KERNEL_OK")
</pallas_src>

<mosaic_0001>
module attributes {stable_mosaic.version = 11 : i64} {
  func.func @_pad_kernel(%arg0: i32, %arg1: i32, %arg2: memref<8x128xi32, #tpu.memory_space<vmem>>, %arg3: memref<8x1xi32, #tpu.memory_space<vmem>>, %arg4: memref<8x128xi32, #tpu.memory_space<vmem>>) attributes {dimension_semantics = [#tpu.dimension_semantics<parallel>, #tpu.dimension_semantics<arbitrary>], iteration_bounds = array<i64: 1, 3>, scalar_prefetch = 0 : i64, scratch_operands = 0 : i64, tpu.core_type = #tpu.core_type<tc>, window_params = [{transform_indices = @transform_0, window_bounds = array<i64: 8, 128>}, {transform_indices = @transform_1, window_bounds = array<i64: 8, 1>}, {transform_indices = @transform_2, window_bounds = array<i64: 8, 128>}]} {
    %c1_i32 = arith.constant 1 : i32
    %0 = arith.addi %arg1, %c1_i32 : i32
    %c128_i32 = arith.constant 128 : i32
    %1 = arith.muli %0, %c128_i32 : i32
    %2 = tpu.iota {dimensions = array<i32: 1>} : vector<8x128xi32>
    %3 = vector.broadcast %1 : i32 to vector<8x128xi32>
    %4 = arith.addi %3, %2 : vector<8x128xi32>
    %c0 = arith.constant 0 : index
    %c0_0 = arith.constant 0 : index
    %5 = vector.load %arg3[%c0, %c0_0] : memref<8x1xi32, #tpu.memory_space<vmem>>, vector<8x1xi32>
    %6 = vector.broadcast %5 : vector<8x1xi32> to vector<8x128xi32>
    %7 = arith.cmpi slt, %4, %6 : vector<8x128xi32>
    %c0_1 = arith.constant 0 : index
    %c0_2 = arith.constant 0 : index
    %8 = vector.load %arg2[%c0_1, %c0_2] : memref<8x128xi32, #tpu.memory_space<vmem>>, vector<8x128xi32>
    %c-1_i32 = arith.constant -1 : i32
    %9 = vector.broadcast %c-1_i32 : i32 to vector<8x128xi32>
    %10 = arith.select %7, %8, %9 : vector<8x128xi1>, vector<8x128xi32>
    %c0_3 = arith.constant 0 : index
    %c0_4 = arith.constant 0 : index
    %11 = vector.load %arg4[%c0_3, %c0_4] : memref<8x128xi32, #tpu.memory_space<vmem>>, vector<8x128xi32>
    tpu.vector_store %arg4[%c0_3, %c0_4], %10 {strides = array<i32>} : memref<8x128xi32, #tpu.memory_space<vmem>>, vector<8x128xi32>,
    return
  }
  func.func @transform_0(%arg0: i32, %arg1: i32) -> (i32, i32) {
    %c1_i32 = arith.constant 1 : i32
    %0 = arith.addi %arg1, %c1_i32 : i32
    %c0_i32 = arith.constant 0 : i32
    return %arg0, %0 : i32, i32
  }
  func.func @transform_1(%arg0: i32, %arg1: i32) -> (i32, i32) {
    %c0_i32 = arith.constant 0 : i32
    %c0_i32_0 = arith.constant 0 : i32
    return %arg0, %c0_i32 : i32, i32
  }
  func.func @transform_2(%arg0: i32, %arg1: i32) -> (i32, i32) {
    %c1_i32 = arith.constant 1 : i32
    %0 = arith.addi %arg1, %c1_i32 : i32
    %c0_i32 = arith.constant 0 : i32
    return %arg0, %0 : i32, i32
  }
}

</mosaic_0001>

<bundles_post_ra>
// kernel: tpu_custom_call.1
= control target key start
LH: loop header
LB: loop body
LE: loop exit
PB: predicated region body
PF: predicated region fallthrough
CT: control target
= control target key end

     0   :  { %7 = vsyncpa [#allocation3], 0  ;;  %s716_s0 = inlined_call_operand.hbm [shape: s32[8,512], index: 0, kind: input, shape index: {}, may-alias: {0,2}]   ;;  %s717_s1 = inlined_call_operand.vmem [shape: s32[8,1], index: 1, kind: input, shape index: {}]   ;;  %s718_s2 = inlined_call_operand.hbm [shape: s32[8,512], index: 2, kind: output, shape index: {}, may-alias: {0,2}]  }
   0x1   :  { %9 = vsyncpa [#allocation3 + $0x1], 0 }
   0x2   :  { %10 = vsyncpa [#allocation4], 0 }
   0x3   :  { %12 = vsyncpa [#allocation4 + $0x1], 0  ;;  %s546_s9 = smov 0   ;;  %s548_s10 = smov 0  }
   0x4   :  { %s550_s11 = smov 0   ;;  %s552_s12 = smov 0  }
   0x5   :  { %s554_s13 = smov 0   ;;  %s556_s14 = smov 0  }
   0x6 LB: > { %s331_s15 = sadd.s32 4294967295, %s526_s14   ;;  %s332_s16 = sadd.s32 4294967294, %s526_s14   ;;  %s526_s14 = sphi %s556_s14, %s18_s14   ;;  %s522_s13 = sphi %s554_s13, %s733_s13   ;;  %s518_s12 = sphi %s552_s12, %s732_s12   ;;  %s514_s11 = sphi %s550_s11, %s731_s11   ;;  %s510_s10 = sphi %s548_s10, %s730_s10   ;;  %s506_s9 = sphi %s546_s9, %s729_s9  }
   0x7   : > { %s27_s17 = sadd.s32 1, %s522_s13  ;;  %s41_s18 = sadd.s32 1, %s514_s11 }
   0x8   : > { %p28_p0 = scmp.ge.s32.totalorder %s27_s17, 3  ;;  %p48_p1 = scmp.ne.s32.totalorder %s514_s11, %s510_s10 }
   0x9   : > { %p49_p2 = scmp.eq.s32.totalorder %s526_s14, 0  ;;  %p54_p3 = scmp.ne.s32.totalorder %s510_s10, %s506_s9 }
   0xa   : > { %s585_s19 = scalar_select %p28_p0, 0, %s27_s17  }
   0xb   : > { %p587_p4 = por %p49_p2, %p48_p1  ;;  %p55_p5 = scmp.eq.s32.totalorder %s331_s15, 0 }
   0xc   : > { %s35_s21 = sadd.s32 1, %s585_s19  ;;  %p108_p6 = scmp.eq.s32.totalorder %s331_s15, 2 }
   0xd   : > { %s37_s22 = ssub.s32 %s27_s17, %s35_s21  ;;  %p592_p7 = por %p55_p5, %p54_p3 }
   0xe   : > { %p39_p8 = scmp.eq.s32.totalorder %s37_s22, 0  ;;  %p596_p9 = por %p108_p6, %p48_p1 }
   0xf   : > { %p114_p10 = scmp.eq.s32.totalorder %s332_s16, 2  ;;  %p360_p12 = scmp.lt.s32.totalorder %s526_s14, 3 }
  0x10   : > { %s722_s24 = scalar_select %p596_p9, 1, 0 }
  0x11   : > { %s601_s25 = scalar_select %p39_p8, %s514_s11, %s41_s18  }
  0x12   : > { %p603_p11 = por %p114_p10, %p54_p3  ;;  %s141_s27 = sand.u32 1, %s514_s11  }
  0x13   : > { %s337_s28 = sshll.u32 %s522_s13, 7  ;;  %s336_s29 = sshll.u32 %s141_s27, 3 }
  0x14   : > { %s723_s26 = scalar_select %p603_p11, 1, 0 }
  0x15   : > { %s264_s4 = scalar_lea.hbm %s716_s0, %s337_s28  ;;  %s145_s6 = scalar_lea.vmem [#allocation2], %s336_s29 }
  0x16   : > { %s613_s5 = scalar_lea.hbm %s264_s4, 128  ;;  %s155_s7 = sshll.u32 %s145_s6, 4  ;;  %s615_s7 = int_to_ptr.vmem [resolvable:$true] %s155_s7 }
  0x17   : > { %p619_p13 = pnand %p360_p12, %p587_p4  ;;  %s142_s15 = scalar_lea.sflag [#allocation3], %s141_s27 }
  0x18   : > { %s442_s16 = scalar_lea.hbm %s264_s4, 256  ;;  %s417_s20 = scalar_lea.hbm %s716_s0, 512 }
  0x19   : > { %p413_p2 = scmp.ne.s32.totalorder %s613_s5, %s442_s16  ;;  %p414_p3 = pneg %p619_p13 }
  0x1a   : > { %p418_p4 = scmp.lt.u32.totalorder %s613_s5, %s716_s0  ;;  %p419_p8 = scmp.lt.u32.totalorder %s417_s20, %s442_s16 }
  0x1b   : > { %p415_p5 = pnand %p414_p3, %p413_p2  ;;  %p421_p12 = scmp.lt.u32.totalorder %s442_s16, %s613_s5 }
  0x1c   : > { %p420_p10 = por %p419_p8, %p418_p4 }
  0x1d   : > { %p416_p6 = pneg %p415_p5 }
  0x1e   : > { %p422_p0 = por %p421_p12, %p420_p10 }
  0x20   : > { %p423_p1 = pnand %p422_p0, %p416_p6 }
  0x22   : > { %426 = shalt.err (!%p423_p1)
}
  0x23   : > { %s427_s27 = scalar_lea.vmem %s615_s7, 128  ;;  %s528_s28 = smov [#allocation2]  }
  0x24   : > { %p428_p2 = scmp.ne.s32.totalorder %s615_s7, %s427_s27  ;;  %s432_s29 = sshll.u32 %s528_s28, 4  ;;  %s433_s29 = int_to_ptr.vmem [resolvable:$false] %s432_s29 }
  0x25   : > { %s434_s30 = scalar_lea.vmem %s433_s29, 256  ;;  %p435_p9 = scmp.lt.s32.totalorder %s615_s7, %s433_s29 }
  0x26   : > { %p430_p5 = pnand %p428_p2, %p414_p3  ;;  %p436_p4 = scmp.lt.s32.totalorder %s434_s30, %s427_s27 }
  0x28   : > { %p431_p11 = pneg %p430_p5  ;;  %p437_p8 = por %p436_p4, %p435_p9 }
  0x2a   : > { %p438_p10 = pnand %p437_p8, %p431_p11 }
  0x2c   : > { %441 = shalt.err (!%p438_p10)
}
  0x2d   : > { %355 = dma.hbm_to_vmem [thread:$0]  (!%p619_p13), %s613_s5, 128, %s615_s7, %s142_s15  }
  0x2e   : > { %p725_p0 = scmp.lt.s32.totalorder %s526_s14, 4  ;;  %p726_p1 = scmp.ge.s32.totalorder %s526_s14, 1 }
  0x30   : > { %p161_p3 = pnand %p726_p1, %p725_p0 }
  0x31   : > { %s654_s3 = sand.u32 (!%p161_p3), 1, %s510_s10  }
  0x32   : > { %164 = sbr.rel (%p161_p3) target bundleno = 204 (0xcc), region = 28  ;;  %s339_s4 = sshll.u32 (!%p161_p3), %s654_s3, 3 }
  0x33   : > { %s167_s6 = scalar_lea.sflag (!%p161_p3), [#allocation3], %s654_s3  ;;  %s170_s16 = scalar_lea.vmem (!%p161_p3), [#allocation2], %s339_s4 }
  0x39   : > { %497 = dma.done.wait (%p592_p7), %s167_s6, 128  }
  0x3a   : > { %499 = vsyncadd (%p592_p7), %s167_s6, 4294967168  ;;  %v529_v0 = vmov 0   ;;  %v207_v1 = vld [vmem:[%s717_s1] sm:$0xff]  ;;  %s346_s8 = sshll.u32 %s518_s12, 7  ;;  %v203_v2 = vlaneseq  ;;  %s194_s20 = scalar_lea.vmem [#allocation5], %s339_s4 }
  0x3b   : > { %411 = vset.pattern.permute.xlu0 %v529_v0  ;;  %s347_s15 = sadd.s32 128, %s346_s8  ;;  %s285_s23 = scalar_lea.hbm %s718_s2, %s346_s8  ;;  %v212_v6 = vld [vmem:[%s170_s16] sm:$0xff] }
  0x3c   : > { %209 = vperm.xlu0 %411, %v207_v1   ;;  %v204_v3 = vand.u32 127, %v203_v2  ;;  %v205_v4 = vstv %s347_s15  ;;  %s232_s21 = sshll.u32 %s194_s20, 4  ;;  %s669_s22 = scalar_lea.hbm %s285_s23, 128  ;;  %s671_s21 = int_to_ptr.vmem [resolvable:$true] %s232_s21 }
  0x3d   : > { %s216_s12 = scalar_lea.sflag [#allocation4], %s654_s3  ;;  %s443_s27 = scalar_lea.vmem %s671_s21, 128 }
  0x3e   : > { %v206_v5 = vadd.s32 %v205_v4, %v204_v3  ;;  %p444_p7 = scmp.ne.s32.totalorder %s671_s21, %s443_s27  ;;  %p727_p9 = scmp.ne.s32.totalorder %s722_s24, 0 }
  0x3f   : > { %s530_s28 = smov [#allocation5]  }
  0x40   : > { %p445_p11 = pnand %p444_p7, %p727_p9  ;;  %s447_s29 = sshll.u32 %s530_s28, 4  ;;  %s448_s29 = int_to_ptr.vmem [resolvable:$false] %s447_s29 }
  0x41   : > { %s449_s30 = scalar_lea.vmem %s448_s29, 256  ;;  %p450_p6 = scmp.lt.s32.totalorder %s671_s21, %s448_s29 }
  0x42   : > { %p446_p13 = pneg %p445_p11  ;;  %p451_p12 = scmp.lt.s32.totalorder %s449_s30, %s443_s27 }
  0x44   : > { %p452_p2 = por %p451_p12, %p450_p6 }
  0x46   : > { %p453_p5 = pnand %p452_p2, %p446_p13 }
  0xbb   : > { %v210_v7 = vpop.permute.xlu0 %209 }
  0xbc   : > { %vm211_vm0 = vcmp.lt.s32.totalorder %v206_v5, %v210_v7 }
  0xbd   : > { %v213_v8 = vsel %vm211_vm0, %v212_v6, 4294967295 }
  0xbe   : > { %214 = vst [vmem:[%s194_s20] sm:$0xff] %v213_v8 }
  0xbf   : > { %456 = shalt.err (!%p453_p5)
}
  0xc0   : > { %s471_s4 = scalar_lea.hbm %s285_s23, 256  ;;  %s461_s16 = scalar_lea.hbm %s718_s2, 512 }
  0xc1   : > { %p458_p4 = scmp.ne.s32.totalorder %s669_s22, %s471_s4  ;;  %p462_p0 = scmp.lt.u32.totalorder %s669_s22, %s718_s2 }
  0xc2   : > { %p463_p1 = scmp.lt.u32.totalorder %s461_s16, %s471_s4  ;;  %p465_p7 = scmp.lt.u32.totalorder %s471_s4, %s669_s22 }
  0xc3   : > { %p459_p8 = pnand %p458_p4, %p727_p9 }
  0xc4   : > { %p464_p3 = por %p463_p1, %p462_p0 }
  0xc5   : > { %p460_p10 = pneg %p459_p8 }
  0xc6   : > { %p466_p11 = por %p465_p7, %p464_p3 }
  0xc8   : > { %p467_p13 = pnand %p466_p11, %p460_p10 }
  0xca   : > { %470 = shalt.err (!%p467_p13)
}
  0xcb   : > { %350 = dma.vmem_to_hbm [thread:$0]  (%p727_p9), %s671_s21, 128, %s669_s22, %s216_s12  }
  0xcc PF: > { %p361_p6 = scmp.ge.s32.totalorder %s526_s14, 2  ;;  %s244_s8 = sand.u32 1, %s506_s9  }
  0xcd   : > { %p728_p12 = scmp.ne.s32.totalorder %s723_s26, 0  ;;  %s245_s15 = scalar_lea.sflag [#allocation4], %s244_s8 }
  0xcf   : > { %p357_p2 = pnand %p361_p6, %p728_p12 }
  0xd1   : > { %501 = dma.done.wait (!%p357_p2), %s245_s15, 128  }
  0xd2   : > { %503 = vsyncadd (!%p357_p2), %s245_s15, 4294967168  ;;  %s18_s14 = sadd.s32 1, %s526_s14   ;;  %s729_s9 = smov %s510_s10 }
  0xd3   : > { %p15_p5 = scmp.ge.s32.totalorder %s18_s14, 5   ;;  %s730_s10 = smov %s514_s11 }
  0xd4   : > { %s731_s11 = smov %s601_s25  ;;  %s732_s12 = smov %s522_s13 }
  0xd5   : > { %s733_s13 = smov %s585_s19  ;;  %17 = sbr.rel (!%p15_p5) target bundleno = 6 (0x6), region = 76 }
  0xdc   :  { %250 = vsyncpa [#allocation3], 1 }
  0xdd   :  { %252 = vsyncpa [#allocation3 + $0x1], 1 }
  0xde   :  { %253 = vsyncpa [#allocation4], 1 }
  0xdf   :  { %255 = vsyncpa [#allocation4 + $0x1], 1 }

</bundles_post_ra>
